<compile_context>
chip_gen: v5e
topology: v5e:2x2
jax: 0.10.0
libtpu: 0.0.40
codegen_flags: <defaults>
</compile_context>

<pallas_src>
import math

import jax
import jax.numpy as jnp
from jax.experimental import pallas as pl
from jax.experimental.pallas import tpu as pltpu


_NEG_BIG = -1e30  # finite "-inf" for padded logit columns (avoids inf arithmetic)


def policy_kernel(x_ref, w1_ref, b1_ref, w2_ref, b2_ref, out_ref):
    # x_ref:  (B, I)  compute dtype (f32 or bf16)
    # w1_ref: (I, H)  compute dtype
    # b1_ref: (1, H)  f32
    # w2_ref: (H, Op) compute dtype, Op = O padded up to a multiple of 128
    # b2_ref: (1, Op) f32; padded columns hold -1e30 so softmax ignores them
    # out_ref:(B, Op) f32
    x = x_ref[...]

    # affine1 + ReLU (MXU matmul, f32 accumulation; bias added once, in f32)
    h = jnp.dot(x, w1_ref[...], preferred_element_type=jnp.float32)
    h = jnp.maximum(h + b1_ref[...], 0.0)

    # affine2 (activations cast back to the weight dtype for the MXU)
    s = jnp.dot(h.astype(w2_ref.dtype), w2_ref[...],
                preferred_element_type=jnp.float32) + b2_ref[...]

    # Numerically stable softmax along the lane axis. Padded columns carry a
    # -1e30 bias -> exp() underflows to 0, so they never affect max / denom.
    m = jnp.max(s, axis=-1, keepdims=True)
    e = jnp.exp(s - m)
    denom = jnp.sum(e, axis=-1, keepdims=True)
    # EUP approximate reciprocal (otherwise-idle bundle slot) + one Newton
    # step so the result still matches the exact softmax to ~1e-7.
    r = pl.reciprocal(denom, approx=True)
    r = r * (2.0 - denom * r)
    out_ref[...] = (e * r).astype(out_ref.dtype)


def _tiled_call(xc, w1c, b1_2d, w2c, b2_2d, *, B, I, H, Opad, TB,
                single_buffer_weights):
    if single_buffer_weights:
        # Grid-invariant operands: DMA'd once, single-buffered. Their block
        # index never changes, so double buffers are pure VMEM waste.
        def resident(shape):
            return pl.BlockSpec(shape, lambda i: (0, 0),
                                pipeline_mode=pl.Buffered(buffer_count=1))
    else:
        def resident(shape):
            return pl.BlockSpec(shape, lambda i: (0, 0))

    return pl.pallas_call(
        policy_kernel,
        out_shape=jax.ShapeDtypeStruct((B, Opad), jnp.float32),
        grid=(pl.cdiv(B, TB),),          # ragged last block handled by Pallas
        in_specs=[
            pl.BlockSpec((TB, I), lambda i: (i, 0)),   # x: streamed, 2-buffered
            resident((I, H)),                          # w1: resident
            resident((1, H)),                          # b1: resident
            resident((H, Opad)),                       # w2: resident, lane-dense
            resident((1, Opad)),                       # b2: resident
        ],
        out_specs=pl.BlockSpec((TB, Opad), lambda i: (i, 0)),
        compiler_params=pltpu.CompilerParams(
            # Split batch tiles across TensorCores (v7x has 2 per chip).
            dimension_semantics=("parallel",),
            # Explicit scoped-VMEM budget: headroom under v7x's 64 MiB
            # physical VMEM, above v5e's 16 MiB scoped default.
            vmem_limit_bytes=48 * 1024 * 1024,
        ),
    )(xc, w1c, b1_2d, w2c, b2_2d)


def policy_forward(x, w1, b1, w2, b2, *, batch_tile=512,
                   compute_dtype=jnp.bfloat16):
    """Policy forward pass.

    x: (B, I) f32; w1: (I, H); b1: (H,); w2: (H, O); b2: (O,)
    Returns (B, O) f32 probabilities (rows sum to 1).

    batch_tile: batch rows per grid step for the tiled path. Keep it a
      multiple of 128 (sweep 256-1024 on v5e/v6e/v7x).
    compute_dtype: dtype of x / w1 / w2 inside the kernel. bf16 (default)
      halves HBM/VMEM traffic and uses the fast MXU path; f32 reproduces the
      PyTorch f32 numerics exactly (accumulation is f32 either way).
    """
    B, I = x.shape
    H = w1.shape[1]
    O = w2.shape[1]

    # Lane-dense output: pad the tiny O axis up to a multiple of 128.
    # Padded logit columns get a -1e30 bias -> probability exactly 0.
    Opad = max(128, ((O + 127) // 128) * 128)
    w2p = jnp.pad(w2, ((0, 0), (0, Opad - O)))
    b2p = jnp.pad(b2.reshape(1, O).astype(jnp.float32),
                  ((0, 0), (0, Opad - O)), constant_values=_NEG_BIG)

    xc = x.astype(compute_dtype)
    w1c = w1.astype(compute_dtype)
    w2c = w2p.astype(compute_dtype)
    b1_2d = b1.reshape(1, H).astype(jnp.float32)

    if B <= batch_tile:
        # Small-batch fast path: gridless, everything resident in VMEM ->
        # no per-grid-step pipeline prologue/epilogue overhead.
        out = pl.pallas_call(
            policy_kernel,
            out_shape=jax.ShapeDtypeStruct((B, Opad), jnp.float32),
            in_specs=[pl.BlockSpec(memory_space=pltpu.MemorySpace.VMEM)] * 5,
            out_specs=pl.BlockSpec(memory_space=pltpu.MemorySpace.VMEM),
        )(xc, w1c, b1_2d, w2c, b2p)
        return out[:, :O]

    # Large-batch path: tile only the batch axis. B > batch_tile guarantees
    # at least 2 grid tiles (keeps both v7x TensorCores busy).
    TB = batch_tile
    assert TB % 8 == 0, "batch_tile must be a multiple of 8 (128 recommended)"

    try:
        out = _tiled_call(xc, w1c, b1_2d, w2c, b2p, B=B, I=I, H=H, Opad=Opad,
                          TB=TB, single_buffer_weights=True)
    except Exception:
        # pl.Buffered(1) not supported by this jax version -> default buffering.
        out = _tiled_call(xc, w1c, b1_2d, w2c, b2p, B=B, I=I, H=H, Opad=Opad,
                          TB=TB, single_buffer_weights=False)
    return out[:, :O]


def init_params(key, input_size, hidden_size, output_size):
    """Deterministic init mimicking nn.Linear's uniform(-1/sqrt(fan_in), ...)."""
    k1, k2, k3, k4 = jax.random.split(key, 4)
    bound1 = 1.0 / math.sqrt(input_size)
    bound2 = 1.0 / math.sqrt(hidden_size)
    # stored as (in, out) == transpose of PyTorch's (out, in) weight layout
    w1 = jax.random.uniform(k1, (input_size, hidden_size), jnp.float32,
                            minval=-bound1, maxval=bound1)
    b1 = jax.random.uniform(k2, (hidden_size,), jnp.float32,
                            minval=-bound1, maxval=bound1)
    w2 = jax.random.uniform(k3, (hidden_size, output_size), jnp.float32,
                            minval=-bound2, maxval=bound2)
    b2 = jax.random.uniform(k4, (output_size,), jnp.float32,
                            minval=-bound2, maxval=bound2)
    return w1, b1, w2, b2


def policy_forward_ref(x, w1, b1, w2, b2):
    """Pure-JAX f32 reference (high-precision matmuls) for correctness."""
    h = jnp.maximum(jnp.dot(x, w1, precision="highest") + b1, 0.0)
    s = jnp.dot(h, w2, precision="highest") + b2
    return jax.nn.softmax(s, axis=1)


if __name__ == "__main__":
    key = jax.random.PRNGKey(0)
    input_size, hidden_size, output_size = 16, 32, 8
    kx, kp, kx2 = jax.random.split(key, 3)
    w1, b1, w2, b2 = init_params(kp, input_size, hidden_size, output_size)

    # --- 1) small-batch gridless path, f32 compute: exact module semantics ---
    batch = 4
    x = jax.random.normal(kx, (batch, input_size), jnp.float32)
    out = jax.block_until_ready(
        policy_forward(x, w1, b1, w2, b2, compute_dtype=jnp.float32))
    ref = policy_forward_ref(x, w1, b1, w2, b2)
    assert out.shape == (batch, output_size)
    assert jnp.allclose(out, ref, atol=1e-5, rtol=1e-5)
    assert jnp.allclose(jnp.sum(out, axis=1), 1.0, atol=1e-5)

    # --- 2) batch-tiled path (ragged B, resident single-buffered weights),
    #        f32 compute ---
    batch2 = 80                      # 80 = 2*32 + 16 -> exercises partial block
    x2 = jax.random.normal(kx2, (batch2, input_size), jnp.float32)
    out2 = jax.block_until_ready(
        policy_forward(x2, w1, b1, w2, b2, batch_tile=32,
                       compute_dtype=jnp.float32))
    ref2 = policy_forward_ref(x2, w1, b1, w2, b2)
    assert out2.shape == (batch2, output_size)
    assert jnp.allclose(out2, ref2, atol=1e-5, rtol=1e-5)
    assert jnp.allclose(jnp.sum(out2, axis=1), 1.0, atol=1e-5)

    # --- 3) batch-tiled path with the default bf16 compute dtype ---
    out3 = jax.block_until_ready(
        policy_forward(x2, w1, b1, w2, b2, batch_tile=32))
    assert out3.shape == (batch2, output_size)
    assert jnp.allclose(out3, ref2, atol=2e-2, rtol=2e-2)
    assert jnp.allclose(jnp.sum(out3, axis=1), 1.0, atol=1e-5)

    print("KERNEL_OK")
</pallas_src>

<mosaic_0001>
module attributes {stable_mosaic.version = 11 : i64} {
  func.func @policy_kernel(%arg0: memref<4x16xf32, #tpu.memory_space<vmem>>, %arg1: memref<16x32xf32, #tpu.memory_space<vmem>>, %arg2: memref<1x32xf32, #tpu.memory_space<vmem>>, %arg3: memref<32x128xf32, #tpu.memory_space<vmem>>, %arg4: memref<1x128xf32, #tpu.memory_space<vmem>>, %arg5: memref<4x128xf32, #tpu.memory_space<vmem>>) attributes {dimension_semantics = [], scalar_prefetch = 0 : i64, scratch_operands = 0 : i64, tpu.core_type = #tpu.core_type<tc>} {
    %c0 = arith.constant 0 : index
    %c0_0 = arith.constant 0 : index
    %0 = vector.load %arg0[%c0, %c0_0] : memref<4x16xf32, #tpu.memory_space<vmem>>, vector<4x16xf32>
    %c0_1 = arith.constant 0 : index
    %c0_2 = arith.constant 0 : index
    %1 = vector.load %arg1[%c0_1, %c0_2] : memref<16x32xf32, #tpu.memory_space<vmem>>, vector<16x32xf32>
    %cst = arith.constant dense<0.000000e+00> : vector<4x32xf32>
    %2 = tpu.matmul %0, %1, %cst {dimension_numbers = #tpu.dot_dimension_numbers<[1], [0], [0], [1], [0, 0, 1, 1], [], []>} : vector<4x16xf32>, vector<16x32xf32>, vector<4x32xf32> -> vector<4x32xf32>
    %c0_3 = arith.constant 0 : index
    %c0_4 = arith.constant 0 : index
    %3 = vector.load %arg2[%c0_3, %c0_4] : memref<1x32xf32, #tpu.memory_space<vmem>>, vector<1x32xf32>
    %4 = vector.broadcast %3 : vector<1x32xf32> to vector<4x32xf32>
    %5 = arith.addf %2, %4 : vector<4x32xf32>
    %cst_5 = arith.constant 0.000000e+00 : f32
    %6 = vector.broadcast %cst_5 : f32 to vector<4x32xf32>
    %7 = arith.maximumf %5, %6 : vector<4x32xf32>
    %c0_6 = arith.constant 0 : index
    %c0_7 = arith.constant 0 : index
    %8 = vector.load %arg3[%c0_6, %c0_7] : memref<32x128xf32, #tpu.memory_space<vmem>>, vector<32x128xf32>
    %cst_8 = arith.constant dense<0.000000e+00> : vector<4x128xf32>
    %9 = tpu.matmul %7, %8, %cst_8 {dimension_numbers = #tpu.dot_dimension_numbers<[1], [0], [0], [1], [0, 0, 1, 1], [], []>} : vector<4x32xf32>, vector<32x128xf32>, vector<4x128xf32> -> vector<4x128xf32>
    %c0_9 = arith.constant 0 : index
    %c0_10 = arith.constant 0 : index
    %10 = vector.load %arg4[%c0_9, %c0_10] : memref<1x128xf32, #tpu.memory_space<vmem>>, vector<1x128xf32>
    %11 = vector.broadcast %10 : vector<1x128xf32> to vector<4x128xf32>
    %12 = arith.addf %9, %11 : vector<4x128xf32>
    %cst_11 = arith.constant dense<0xFF800000> : vector<4xf32>
    %13 = vector.multi_reduction <maximumf>, %12, %cst_11 [1] : vector<4x128xf32> to vector<4xf32>
    %14 = vector.shape_cast %13 : vector<4xf32> to vector<4x1xf32>
    %15 = vector.broadcast %14 : vector<4x1xf32> to vector<4x128xf32>
    %16 = arith.subf %12, %15 : vector<4x128xf32>
    %17 = math.exp %16 : vector<4x128xf32>
    %cst_12 = arith.constant dense<0.000000e+00> : vector<4xf32>
    %18 = vector.multi_reduction <add>, %17, %cst_12 [1] : vector<4x128xf32> to vector<4xf32>
    %19 = vector.shape_cast %18 : vector<4xf32> to vector<4x1xf32>
    %20 = tpu.reciprocal %19 {approx = true} : vector<4x1xf32> -> vector<4x1xf32>
    %21 = arith.mulf %19, %20 : vector<4x1xf32>
    %cst_13 = arith.constant 2.000000e+00 : f32
    %22 = vector.broadcast %cst_13 : f32 to vector<4x1xf32>
    %23 = arith.subf %22, %21 : vector<4x1xf32>
    %24 = arith.mulf %20, %23 : vector<4x1xf32>
    %25 = vector.broadcast %24 : vector<4x1xf32> to vector<4x128xf32>
    %26 = arith.mulf %17, %25 : vector<4x128xf32>
    %c0_14 = arith.constant 0 : index
    %c0_15 = arith.constant 0 : index
    %27 = vector.load %arg5[%c0_14, %c0_15] : memref<4x128xf32, #tpu.memory_space<vmem>>, vector<4x128xf32>
    tpu.vector_store %arg5[%c0_14, %c0_15], %26 {strides = array<i32>} : memref<4x128xf32, #tpu.memory_space<vmem>>, vector<4x128xf32>,
    return
  }
}

</mosaic_0001>

<bundles_post_ra>
// kernel: tpu_custom_call.1
= control target key start
LH: loop header
LB: loop body
LE: loop exit
PB: predicated region body
PF: predicated region fallthrough
CT: control target
= control target key end

     0   :  { %10 = vsyncpa [#allocation3], 0  ;;  %s334_s0 = inlined_call_operand.hbm [shape: f32[4,16], index: 0, kind: input, shape index: {}]   ;;  %s335_s1 = inlined_call_operand.hbm [shape: f32[16,32], index: 1, kind: input, shape index: {}]   ;;  %s336_s2 = inlined_call_operand.vmem [shape: f32[1,32], index: 2, kind: input, shape index: {}]   ;;  %s337_s3 = inlined_call_operand.hbm [shape: f32[32,128], index: 3, kind: input, shape index: {}]   ;;  %s338_s4 = inlined_call_operand.vmem [shape: f32[1,128], index: 4, kind: input, shape index: {}]   ;;  %s339_s5 = inlined_call_operand.hbm [shape: f32[4,128], index: 5, kind: output, shape index: {}]  }
   0x1   :  { %11 = vsyncpa [#allocation6], 0  ;;  %s28_s20 = sshll.u32 %s335_s1, 4  ;;  %s29_s20 = int_to_ptr.hbm [resolvable:$true] %s28_s20 }
   0x2   :  { %12 = vsyncpa [#allocation4], 0  ;;  %s280_s21 = smov [#allocation5]   ;;  %s18_s25 = sshll.u32 %s334_s0, 4  ;;  %s19_s25 = int_to_ptr.hbm [resolvable:$true] %s18_s25 }
   0x3   :  { %s30_s22 = sshll.u32 %s280_s21, 4  ;;  %s281_s26 = smov 128   ;;  %s31_s22 = int_to_ptr.vmem [resolvable:$true] %s30_s22 }
   0x4   :  { %s282_s27 = smov 8   ;;  %s283_s28 = smov [#allocation2]  }
   0x5   :  { %36 = dma.hbm_to_vmem [thread:$0]  %s29_s20, 256, %s31_s22, [#allocation6], %s281_s26, %s281_s26, %s282_s27  }
   0x6   :  { %s20_s29 = sshll.u32 %s283_s28, 4  ;;  %s43_s7 = sshll.u32 %s337_s3, 4  ;;  %s21_s29 = int_to_ptr.vmem [resolvable:$true] %s20_s29  ;;  %s44_s7 = int_to_ptr.hbm [resolvable:$true] %s43_s7 }
   0x7   :  { %23 = dma.hbm_to_vmem [thread:$0]  %s19_s25, 64, %s21_s29, [#allocation3]  }
   0x8   :  { %s284_s1 = smov [#allocation7]  }
   0x9   :  { %s45_s8 = sshll.u32 %s284_s1, 4  ;;  %s46_s8 = int_to_ptr.vmem [resolvable:$true] %s45_s8 }
   0xa   :  { %51 = dma.hbm_to_vmem [thread:$0]  %s44_s7, 512, %s46_s8, [#allocation6], %s281_s26, %s281_s26, %s282_s27  }
   0xb   :  { %274 = dma.done.wait [#allocation3], 64  }
   0xc   :  { %275 = vsyncadd [#allocation3], 4294967232 }
   0xd   :  { %276 = dma.done.wait [#allocation6], 768  }
   0xe   :  { %277 = vsyncadd [#allocation6], 4294966528  ;;  %v68_v0 = vld [vmem:[#allocation5 + $0x8] sm:$0xff]  ;;  %v67_v1 = vld [vmem:[#allocation5] sm:$0xff]  ;;  %vm73_vm0 = vcmask 130048   ;;  %vm106_vm1 = vcmask 261120  }
   0xf   :  { %91 = vmatpush.msra.mxu0 %v68_v0  ;;  %v66_v2 = vld [vmem:[#allocation2] sm:$0xf]  ;;  %v101_v3 = vld [vmem:[#allocation7 + $0x18] sm:$0xff]  ;;  %v100_v4 = vld [vmem:[#allocation7 + $0x10] sm:$0xff]  ;;  %vm130_vm2 = vcmask 1043456   ;;  %s153_s13 = sshll.u32 %s339_s5, 4  ;;  %s154_s13 = int_to_ptr.hbm [resolvable:$true] %s153_s13 }
  0x10   :  { %122 = vmatpush.msra.mxu1 %v101_v3  ;;  %v99_v5 = vld [vmem:[#allocation7 + $0x8] sm:$0xff]  ;;  %v98_v6 = vld [vmem:[#allocation7] sm:$0xff] }
  0x11   :  { %92 = vmatpush.msra.mxu0 %v67_v1  ;;  %v172_v7 = vld [vmem:[%s336_s2] ss:$0 sm:$0xff]  ;;  %s285_s2 = smov [#allocation8]  }
  0x12   :  { %164 = vmatmul.msk.f32.vlgmr.msra.gmra.mxu0 %vm73_vm0, %v66_v2  ;;  %123 = vmatpush.msra.mxu1 %v100_v4  ;;  %v173_v11 = vld [vmem:[%s338_s4] ss:$0 sm:$0xff]  ;;  %s151_s11 = sshll.u32 %s285_s2, 4  ;;  %s152_s11 = int_to_ptr.vmem [resolvable:$true] %s151_s11 }
  0x14   :  { %124 = vmatpush.msra.mxu1 %v99_v5 }
  0x16   :  { %125 = vmatpush.msra.mxu1 %v98_v6 }
  0x8f   :  { %v94_v8 = vpop.f32.mrf.mxu0 }
  0x90   :  { %v95_v9 = vadd.f32 %v172_v7, %v94_v8 }
  0x92   :  { %v97_v10 = vmax.f32 %v95_v9, 0.0 }
  0x94   :  { %165 = vmatmul.msk.f32.vlgmr.msra.gmra.mxu1 %vm106_vm1, %v97_v10 }
 0x111   :  { %v127_v12 = vpop.f32.mrf.mxu1 }
 0x112   :  { %v128_v13 = vadd.f32 %v173_v11, %v127_v12 }
 0x114   :  { %v131_v14 = vsel %vm130_vm2, %v128_v13, -inf }
 0x115   :  { %132 = vmax.xlane.f32.xlu0 %v131_v14 }
 0x188   :  { %v133_v15 = vpop.xlane.xlu0 %132 }
 0x189   :  { %v134_v16 = vsub.f32 %v128_v13, %v133_v15 }
 0x18b   :  { %v135_v17 = vmul.f32 1.442695, %v134_v16 }
 0x18d   :  { %174 = vpow2.f32 %v135_v17 }
 0x193   :  { %v175_v18 = vpop.eup %174 }
 0x194   :  { %v137_v19 = vsel %vm130_vm2, %v175_v18, 0.0 }
 0x195   :  { %138 = vadd.xlane.f32.xlu0 %v137_v19 }
 0x208   :  { %v139_v20 = vpop.xlane.xlu0 %138 }
 0x209   :  { %176 = vrcp.f32 %v139_v20 }
 0x20f   :  { %v177_v21 = vpop.eup %176 }
 0x210   :  { %v141_v22 = vmul.f32 %v177_v21, %v139_v20 }
 0x212   :  { %v142_v23 = vsub.f32 2.0, %v141_v22 }
 0x214   :  { %v143_v24 = vmul.f32 %v177_v21, %v142_v23 }
 0x216   :  { %v144_v25 = vmul.f32 %v175_v18, %v143_v24 }
 0x218   :  { %145 = vst [vmem:[#allocation8] sm:$0xf] %v144_v25 }
 0x219   :  { %156 = dma.vmem_to_hbm [thread:$0]  %s152_s11, 64, %s154_s13, [#allocation4]  }
 0x21a   :  { %278 = dma.done.wait [#allocation4], 64  }
 0x21b   :  { %279 = vsyncadd [#allocation4], 4294967232 }
 0x21c   :  { %161 = vsyncpa [#allocation3], 1 }
 0x21d   :  { %162 = vsyncpa [#allocation6], 1 }
 0x21e   :  { %163 = vsyncpa [#allocation4], 1 }

</bundles_post_ra>
